<compile_context>
chip_gen: v7x
topology: tpu7x:2x2x1
jax: 0.10.0
libtpu: 0.0.40
codegen_flags: <defaults>
</compile_context>

<pallas_src>
import functools

import jax
import jax.numpy as jnp
import numpy as np
from jax.experimental import pallas as pl
from jax.experimental.pallas import tpu as pltpu


def _rup(n, m):
    return ((n + m - 1) // m) * m


def _sseu_kernel(x_ref, prm_ref, mrow_ref, mcol_ref, o_ref, *,
                 C, Cs, Csp, Cp, H, W, Hp, HWp):
    """One batch element of pda / SSEU forward, lane-dense (C, H*W) layout.

    x_ref    : (1, C, HW)        input feature map (flattened spatial)
    prm_ref  : (4*Csp+2*Cp, >=128) packed parameter slab (see wrapper for row layout)
    mrow_ref : (Hp+rup(W,8), HW) host-precomputed masks: rows [0:H]=eh, [Hp:Hp+W]=fw
    mcol_ref : (HWp+HW, H)       host-precomputed masks: rows [0:HW]=fh(=eh^T), [HWp:]=ew(=fw^T)
    o_ref    : (1, C, HW)        output
    """
    HW = H * W
    f32 = jnp.float32
    x2 = x_ref[0]                                                   # (C, HW)

    # ---- packed parameter slab: static, sublane-aligned, lane-0 views ----
    spw   = prm_ref[Csp:2 * Csp, 0:Csp]                             # spatial q/k/v (rows 0..2)
    cattw = prm_ref[2 * Csp:3 * Csp, 0:Csp]                         # fc∘channel_v, BN scale folded
    cattb = prm_ref[3 * Csp:4 * Csp, 0:1]                           # folded catten BN shift
    c1w   = prm_ref[4 * Csp:4 * Csp + C, 0:Csp]                     # conv1 weight, BN scale folded
    c1sh  = prm_ref[4 * Csp + Cp:4 * Csp + Cp + C, 0:1]             # conv1 BN shift

    # ---- host-precomputed structural reshape masks (resident constants) ----
    eh = mrow_ref[0:H, :]                                           # eh[r,i] = (i//W == r)
    fw = mrow_ref[Hp:Hp + W, :]                                     # fw[r,i] = (i% W == r)
    fh = mcol_ref[0:HW, :]                                          # = eh^T
    ew = mcol_ref[HWp:HWp + HW, :]                                  # = fw^T

    # splited = sum of the s_size=4 channel groups.
    if Cs % 8 == 0:
        # sublane-aligned slice adds: pure VPU, no MXU pass over K=C, no selector operand.
        splited = (x2[0:Cs] + x2[Cs:2 * Cs] + x2[2 * Cs:3 * Cs]
                   + x2[3 * Cs:4 * Cs]).astype(f32)                 # (Cs == Csp, HW)
    else:
        gsum = prm_ref[0:Csp, 0:C]                                  # (Csp, C) group-sum selector
        splited = jnp.dot(gsum, x2, preferred_element_type=f32)     # (Csp, HW), padded rows = 0

    # spatial q/k/v 1x1 convs -> one matmul; rows 0..2 are q/k/v.
    maps = jnp.dot(spw, splited, preferred_element_type=f32)        # (Csp, HW)
    q_row, k_row, v_row = maps[0:1, :], maps[1:2, :], maps[2:3, :]

    # (1,HW) rows -> (H,W)/(W,H) via mask matmuls: stays on the MXU, no in-kernel reshapes.
    k_m = jnp.dot(eh * k_row, ew, preferred_element_type=f32)       # (H, W)  = k_map
    q_t = jnp.dot(fw * q_row, fh, preferred_element_type=f32)       # (W, H)  = q_map^T
    v_t = jnp.dot(fw * v_row, fh, preferred_element_type=f32)       # (W, H)  = v_map^T

    # spatial attention: softmax(q^T k) v^T + v^T   (no explicit identity matrix needed).
    qk = jnp.dot(q_t, k_m, preferred_element_type=f32)              # (W, W)
    e = jnp.exp(qk - jnp.max(qk, axis=-1, keepdims=True))
    alpha = e / jnp.sum(e, axis=-1, keepdims=True)
    sat = jnp.dot(alpha, v_t, preferred_element_type=f32) + v_t     # (W, H)

    # flatten sat back to a flat row: sat_row[i] = sat[i//W, i%W]  (how the (B,1,W,H)
    # satten map broadcasts onto the NCHW tensor when H == W).
    sat_row = jnp.sum(eh * jnp.dot(sat, fw, preferred_element_type=f32),
                      axis=0, keepdims=True)                        # (1, HW)

    # channel attention: GAP -> (BN + channel_v + fc folded into one affine) -> sigmoid.
    # channel_q/channel_k + LayerNorm feed a softmax over a length-1 axis (== 1), so they
    # drop out of the math exactly.
    gap = jnp.sum(splited, axis=-1, keepdims=True) * (1.0 / HW)     # (Csp, 1)
    att = jax.nn.sigmoid(
        jnp.dot(cattw, gap, preferred_element_type=f32) + cattb)    # (Csp, 1)

    # combine, conv1 (1x1 Cs->C, BN scale pre-folded), ReLU, gate, residual:
    # one matmul, a short VPU epilogue, one unmasked (C, HW) store.
    atten2 = sat_row + splited * (att + 1.0)                        # (Csp, HW)
    big = jnp.dot(c1w, atten2, preferred_element_type=f32)          # (C, HW)
    y = jnp.maximum(big + c1sh, 0.0)
    o_ref[0] = (y * x2 + x2).astype(o_ref.dtype)


def pda_forward(x, params):
    B, C, H, W = x.shape
    assert C % 4 == 0, "in_channels must be divisible by s_size=4"
    assert H == W, "module broadcast (B,1,W,H) + (B,Cs,H,W) requires square spatial maps"
    Cs = C // 4
    HW = H * W
    Csp = _rup(max(Cs, 8), 8)        # bottleneck channels padded to full sublanes
    Cp = _rup(C, 8)
    Hp = _rup(H, 8)
    HWp = _rup(HW, 8)
    f32 = jnp.float32

    # ---------------- host-side constant folding (one-time, no per-pixel compute) -------
    fc_cv = params["fcw"] @ params["cvw"]                 # fc ∘ channel_v (both bias-free)
    ns, nb = params["cvecs"][:, 0], params["cvecs"][:, 1]  # catten BN scale / shift (eval)
    cattw = fc_cv * ns[None, :]                           # absorbs BN scale
    cattb = fc_cv @ nb                                    # absorbs BN shift, (Cs,)
    c1s, c1b = params["c1aff"][0], params["c1aff"][1]     # conv1 BN scale / shift (eval)
    c1w = params["c1w"] * c1s[:, None]                    # fold BN scale into conv1 weight
    gsum = (jnp.arange(C)[None, :] % Cs ==
            jnp.arange(Cs)[:, None]).astype(f32)          # (Cs, C) group-sum selector

    # all small parameters packed into ONE slab -> one resident DMA instead of six.
    # row layout (all sections start at multiples of 8 rows, payload at lane 0):
    #   [0      : Cs         ] gsum      (Cs, C)
    #   [Csp    : Csp+3      ] spw       (3, Cs)
    #   [2*Csp  : 2*Csp+Cs   ] cattw     (Cs, Cs)
    #   [3*Csp  : 3*Csp+Cs   ] cattb     (Cs, 1)
    #   [4*Csp  : 4*Csp+C    ] c1w       (C, Cs)   (BN scale folded)
    #   [4*Csp+Cp : +C       ] c1 shift  (C, 1)
    slab_w = _rup(max(C, Csp), 128)
    prm = jnp.zeros((4 * Csp + 2 * Cp, slab_w), f32)
    prm = prm.at[0:Cs, 0:C].set(gsum)
    prm = prm.at[Csp:Csp + 3, 0:Cs].set(params["spw"])
    prm = prm.at[2 * Csp:2 * Csp + Cs, 0:Cs].set(cattw)
    prm = prm.at[3 * Csp:3 * Csp + Cs, 0].set(cattb)
    prm = prm.at[4 * Csp:4 * Csp + C, 0:Cs].set(c1w)
    prm = prm.at[4 * Csp + Cp:4 * Csp + Cp + C, 0].set(c1b)

    # structural reshape masks precomputed ONCE here (pure functions of H, W) with exact
    # integer div/mod, instead of being rebuilt in-kernel every grid step.
    ii = jnp.arange(HW)
    eh = (ii[None, :] // W == jnp.arange(H)[:, None]).astype(f32)   # (H, HW)
    fw = (ii[None, :] % W == jnp.arange(W)[:, None]).astype(f32)    # (W, HW)
    mrow = jnp.zeros((Hp + _rup(W, 8), HW), f32)
    mrow = mrow.at[0:H, :].set(eh)
    mrow = mrow.at[Hp:Hp + W, :].set(fw)
    mcol = jnp.zeros((HWp + HW, H), f32)
    mcol = mcol.at[0:HW, :].set(eh.T)                               # fh
    mcol = mcol.at[HWp:HWp + HW, :].set(fw.T)                       # ew  (H == W)

    x_flat = x.reshape(B, C, HW)            # lane-dense working layout

    kernel = functools.partial(_sseu_kernel, C=C, Cs=Cs, Csp=Csp, Cp=Cp,
                               H=H, W=W, Hp=Hp, HWp=HWp)
    out_flat = pl.pallas_call(
        kernel,
        out_shape=jax.ShapeDtypeStruct((B, C, HW), jnp.float32),
        grid_spec=pltpu.PrefetchScalarGridSpec(
            num_scalar_prefetch=0,
            # One batch element per step.  B=2 "parallel" steps keep both v7x TensorCores
            # busy; on single-TC v5e/v6e the constants (prm/mrow/mcol) have constant index
            # maps so they are DMA'd once and stay resident across steps.
            grid=(B,),
            in_specs=[
                pl.BlockSpec((1, C, HW), lambda b: (b, 0, 0)),      # x (lane-dense)
                pl.BlockSpec(prm.shape, lambda b: (0, 0)),          # packed params (resident)
                pl.BlockSpec(mrow.shape, lambda b: (0, 0)),         # eh / fw (resident)
                pl.BlockSpec(mcol.shape, lambda b: (0, 0)),         # fh / ew (resident)
            ],
            out_specs=pl.BlockSpec((1, C, HW), lambda b: (b, 0, 0)),
        ),
        compiler_params=pltpu.CompilerParams(
            dimension_semantics=("parallel",)),
    )(x_flat, prm, mrow, mcol)
    return out_flat.reshape(B, C, H, W)


def init_params(key, C):
    # TODO(synk): channel_q/channel_k + LayerNorm and SSEU.conv1_1 exist in __init__ but
    # never affect the forward output (length-1 softmax == 1 / layer never called), so
    # they are not materialized here.
    Cs = C // 4
    eps = 1e-5
    ks = jax.random.split(key, 12)
    spw = 0.3 * jax.random.normal(ks[0], (3, Cs), jnp.float32)            # spatial q/k/v
    g = 1.0 + 0.1 * jax.random.normal(ks[1], (Cs,), jnp.float32)          # catten.norm BN
    b = 0.1 * jax.random.normal(ks[2], (Cs,), jnp.float32)
    rm = 0.1 * jax.random.normal(ks[3], (Cs,), jnp.float32)
    rv = jax.random.uniform(ks[4], (Cs,), jnp.float32, 0.5, 1.5)
    ns = g / jnp.sqrt(rv + eps)
    nb = b - rm * ns
    cvecs = jnp.stack([ns, nb], axis=1)                                   # (Cs, 2)
    cvw = 0.3 * jax.random.normal(ks[5], (Cs, Cs), jnp.float32)           # channel_v
    fcw = 0.3 * jax.random.normal(ks[6], (Cs, Cs), jnp.float32)           # fc
    c1w = 0.3 * jax.random.normal(ks[7], (C, Cs), jnp.float32)            # conv1 weight
    g2 = 1.0 + 0.1 * jax.random.normal(ks[8], (C,), jnp.float32)          # conv1 BN
    b2 = 0.1 * jax.random.normal(ks[9], (C,), jnp.float32)
    rm2 = 0.1 * jax.random.normal(ks[10], (C,), jnp.float32)
    rv2 = jax.random.uniform(ks[11], (C,), jnp.float32, 0.5, 1.5)
    c1s = g2 / jnp.sqrt(rv2 + eps)
    c1b = b2 - rm2 * c1s
    c1aff = jnp.stack([c1s, c1b], axis=0)                                 # (2, C)
    return dict(spw=spw, cvecs=cvecs, cvw=cvw, fcw=fcw, c1w=c1w, c1aff=c1aff)


def pda_reference(x, params):
    """Pure-JAX reference mirroring the PyTorch forward (eval mode), un-folded params."""
    B, C, H, W = x.shape
    Cs = C // 4
    splits = [x[:, g * Cs:(g + 1) * Cs] for g in range(4)]
    sp = splits[0] + splits[1] + splits[2] + splits[3]
    maps = jnp.einsum("rc,bchw->brhw", params["spw"], sp)
    q_map, k_map, v_map = maps[:, 0], maps[:, 1], maps[:, 2]
    qk = jnp.einsum("bhw,bhv->bwv", q_map, k_map)
    alpha = jax.nn.softmax(qk, axis=-1)
    v_t = jnp.transpose(v_map, (0, 2, 1))
    sat = jnp.einsum("bwu,buh->bwh", alpha, v_t) + v_t
    gap = jnp.mean(sp, axis=(2, 3))
    xn = gap * params["cvecs"][:, 0] + params["cvecs"][:, 1]
    vc = jnp.einsum("oc,bc->bo", params["cvw"], xn)
    att = jax.nn.sigmoid(jnp.einsum("oc,bc->bo", params["fcw"], vc))
    ca = sp * att[:, :, None, None] + sp
    atten = sat[:, None, :, :] + ca
    big = jnp.einsum("oc,bchw->bohw", params["c1w"], atten)
    scale = params["c1aff"][0][None, :, None, None]
    shift = params["c1aff"][1][None, :, None, None]
    big = jnp.maximum(big * scale + shift, 0.0)
    return big * x + x


if __name__ == "__main__":
    B, C, H, W = 2, 16, 16, 16   # in_channels=16 -> Cs = 4
    key = jax.random.PRNGKey(0)
    kx, kp = jax.random.split(key)
    x = jax.random.normal(kx, (B, C, H, W), jnp.float32)
    params = init_params(kp, C)

    out = jax.block_until_ready(pda_forward(x, params))
    ref = jax.block_until_ready(pda_reference(x, params))

    assert out.shape == (B, C, H, W) and out.dtype == jnp.float32
    max_err = float(jnp.max(jnp.abs(out - ref)))
    if not np.isfinite(max_err) or max_err > 2e-3:
        raise SystemExit(f"mismatch vs reference: max abs err = {max_err}")
    print("KERNEL_OK")
</pallas_src>

<mosaic_0001>
module attributes {stable_mosaic.version = 11 : i64} {
  func.func @_sseu_kernel(%arg0: i32, %arg1: memref<1x16x256xf32, #tpu.memory_space<vmem>>, %arg2: memref<64x128xf32, #tpu.memory_space<vmem>>, %arg3: memref<32x256xf32, #tpu.memory_space<vmem>>, %arg4: memref<512x16xf32, #tpu.memory_space<vmem>>, %arg5: memref<1x16x256xf32, #tpu.memory_space<vmem>>) attributes {dimension_semantics = [#tpu.dimension_semantics<parallel>], iteration_bounds = array<i64: 2>, scalar_prefetch = 0 : i64, scratch_operands = 0 : i64, tpu.core_type = #tpu.core_type<tc>, window_params = [{transform_indices = @transform_0, window_bounds = array<i64: 1, 16, 256>}, {pipeline_mode = #tpu.pipeline_mode<synchronous>, transform_indices = @transform_1, window_bounds = array<i64: 64, 128>}, {pipeline_mode = #tpu.pipeline_mode<synchronous>, transform_indices = @transform_2, window_bounds = array<i64: 32, 256>}, {pipeline_mode = #tpu.pipeline_mode<synchronous>, transform_indices = @transform_3, window_bounds = array<i64: 512, 16>}, {transform_indices = @transform_4, window_bounds = array<i64: 1, 16, 256>}]} {
    %c0 = arith.constant 0 : index
    %c0_0 = arith.constant 0 : index
    %c0_1 = arith.constant 0 : index
    %0 = vector.load %arg1[%c0, %c0_0, %c0_1] : memref<1x16x256xf32, #tpu.memory_space<vmem>>, vector<1x16x256xf32>
    %1 = vector.shape_cast %0 : vector<1x16x256xf32> to vector<16x256xf32>
    %c8 = arith.constant 8 : index
    %c0_2 = arith.constant 0 : index
    %2 = vector.load %arg2[%c8, %c0_2] : memref<64x128xf32, #tpu.memory_space<vmem>>, vector<8x8xf32>
    %c16 = arith.constant 16 : index
    %c0_3 = arith.constant 0 : index
    %3 = vector.load %arg2[%c16, %c0_3] : memref<64x128xf32, #tpu.memory_space<vmem>>, vector<8x8xf32>
    %c24 = arith.constant 24 : index
    %c0_4 = arith.constant 0 : index
    %4 = vector.load %arg2[%c24, %c0_4] : memref<64x128xf32, #tpu.memory_space<vmem>>, vector<8x1xf32>
    %c32 = arith.constant 32 : index
    %c0_5 = arith.constant 0 : index
    %5 = vector.load %arg2[%c32, %c0_5] : memref<64x128xf32, #tpu.memory_space<vmem>>, vector<16x8xf32>
    %c48 = arith.constant 48 : index
    %c0_6 = arith.constant 0 : index
    %6 = vector.load %arg2[%c48, %c0_6] : memref<64x128xf32, #tpu.memory_space<vmem>>, vector<16x1xf32>
    %c0_7 = arith.constant 0 : index
    %c0_8 = arith.constant 0 : index
    %7 = vector.load %arg3[%c0_7, %c0_8] : memref<32x256xf32, #tpu.memory_space<vmem>>, vector<16x256xf32>
    %c16_9 = arith.constant 16 : index
    %c0_10 = arith.constant 0 : index
    %8 = vector.load %arg3[%c16_9, %c0_10] : memref<32x256xf32, #tpu.memory_space<vmem>>, vector<16x256xf32>
    %c0_11 = arith.constant 0 : index
    %c0_12 = arith.constant 0 : index
    %9 = vector.load %arg4[%c0_11, %c0_12] : memref<512x16xf32, #tpu.memory_space<vmem>>, vector<256x16xf32>
    %c256 = arith.constant 256 : index
    %c0_13 = arith.constant 0 : index
    %10 = vector.load %arg4[%c256, %c0_13] : memref<512x16xf32, #tpu.memory_space<vmem>>, vector<256x16xf32>
    %c0_14 = arith.constant 0 : index
    %c0_15 = arith.constant 0 : index
    %11 = vector.load %arg2[%c0_14, %c0_15] : memref<64x128xf32, #tpu.memory_space<vmem>>, vector<8x16xf32>
    %cst = arith.constant dense<0.000000e+00> : vector<8x256xf32>
    %12 = tpu.matmul %11, %1, %cst {dimension_numbers = #tpu.dot_dimension_numbers<[1], [0], [0], [1], [0, 0, 1, 1], [], []>} : vector<8x16xf32>, vector<16x256xf32>, vector<8x256xf32> -> vector<8x256xf32>
    %cst_16 = arith.constant dense<0.000000e+00> : vector<8x256xf32>
    %13 = tpu.matmul %2, %12, %cst_16 {dimension_numbers = #tpu.dot_dimension_numbers<[1], [0], [0], [1], [0, 0, 1, 1], [], []>} : vector<8x8xf32>, vector<8x256xf32>, vector<8x256xf32> -> vector<8x256xf32>
    %14 = vector.extract_strided_slice %13 {offsets = [0, 0], sizes = [1, 256], strides = [1, 1]} : vector<8x256xf32> to vector<1x256xf32>
    %15 = vector.extract_strided_slice %13 {offsets = [1, 0], sizes = [1, 256], strides = [1, 1]} : vector<8x256xf32> to vector<1x256xf32>
    %16 = vector.extract_strided_slice %13 {offsets = [2, 0], sizes = [1, 256], strides = [1, 1]} : vector<8x256xf32> to vector<1x256xf32>
    %17 = vector.broadcast %15 : vector<1x256xf32> to vector<16x256xf32>
    %18 = arith.mulf %7, %17 : vector<16x256xf32>
    %cst_17 = arith.constant dense<0.000000e+00> : vector<16x16xf32>
    %19 = tpu.matmul %18, %10, %cst_17 {dimension_numbers = #tpu.dot_dimension_numbers<[1], [0], [0], [1], [0, 0, 1, 1], [], []>} : vector<16x256xf32>, vector<256x16xf32>, vector<16x16xf32> -> vector<16x16xf32>
    %20 = vector.broadcast %14 : vector<1x256xf32> to vector<16x256xf32>
    %21 = arith.mulf %8, %20 : vector<16x256xf32>
    %cst_18 = arith.constant dense<0.000000e+00> : vector<16x16xf32>
    %22 = tpu.matmul %21, %9, %cst_18 {dimension_numbers = #tpu.dot_dimension_numbers<[1], [0], [0], [1], [0, 0, 1, 1], [], []>} : vector<16x256xf32>, vector<256x16xf32>, vector<16x16xf32> -> vector<16x16xf32>
    %23 = vector.broadcast %16 : vector<1x256xf32> to vector<16x256xf32>
    %24 = arith.mulf %8, %23 : vector<16x256xf32>
    %cst_19 = arith.constant dense<0.000000e+00> : vector<16x16xf32>
    %25 = tpu.matmul %24, %9, %cst_19 {dimension_numbers = #tpu.dot_dimension_numbers<[1], [0], [0], [1], [0, 0, 1, 1], [], []>} : vector<16x256xf32>, vector<256x16xf32>, vector<16x16xf32> -> vector<16x16xf32>
    %cst_20 = arith.constant dense<0.000000e+00> : vector<16x16xf32>
    %26 = tpu.matmul %22, %19, %cst_20 {dimension_numbers = #tpu.dot_dimension_numbers<[1], [0], [0], [1], [0, 0, 1, 1], [], []>} : vector<16x16xf32>, vector<16x16xf32>, vector<16x16xf32> -> vector<16x16xf32>
    %cst_21 = arith.constant dense<0xFF800000> : vector<16xf32>
    %27 = vector.multi_reduction <maximumf>, %26, %cst_21 [1] : vector<16x16xf32> to vector<16xf32>
    %28 = vector.shape_cast %27 : vector<16xf32> to vector<16x1xf32>
    %29 = vector.broadcast %28 : vector<16x1xf32> to vector<16x16xf32>
    %30 = arith.subf %26, %29 : vector<16x16xf32>
    %31 = math.exp %30 : vector<16x16xf32>
    %cst_22 = arith.constant dense<0.000000e+00> : vector<16xf32>
    %32 = vector.multi_reduction <add>, %31, %cst_22 [1] : vector<16x16xf32> to vector<16xf32>
    %33 = vector.shape_cast %32 : vector<16xf32> to vector<16x1xf32>
    %34 = vector.broadcast %33 : vector<16x1xf32> to vector<16x16xf32>
    %35 = arith.divf %31, %34 : vector<16x16xf32>
    %cst_23 = arith.constant dense<0.000000e+00> : vector<16x16xf32>
    %36 = tpu.matmul %35, %25, %cst_23 {dimension_numbers = #tpu.dot_dimension_numbers<[1], [0], [0], [1], [0, 0, 1, 1], [], []>} : vector<16x16xf32>, vector<16x16xf32>, vector<16x16xf32> -> vector<16x16xf32>
    %37 = arith.addf %36, %25 : vector<16x16xf32>
    %cst_24 = arith.constant dense<0.000000e+00> : vector<16x256xf32>
    %38 = tpu.matmul %37, %8, %cst_24 {dimension_numbers = #tpu.dot_dimension_numbers<[1], [0], [0], [1], [0, 0, 1, 1], [], []>} : vector<16x16xf32>, vector<16x256xf32>, vector<16x256xf32> -> vector<16x256xf32>
    %39 = arith.mulf %7, %38 : vector<16x256xf32>
    %cst_25 = arith.constant dense<0.000000e+00> : vector<256xf32>
    %40 = vector.multi_reduction <add>, %39, %cst_25 [0] : vector<16x256xf32> to vector<256xf32>
    %41 = vector.shape_cast %40 : vector<256xf32> to vector<1x256xf32>
    %cst_26 = arith.constant dense<0.000000e+00> : vector<8xf32>
    %42 = vector.multi_reduction <add>, %12, %cst_26 [1] : vector<8x256xf32> to vector<8xf32>
    %43 = vector.shape_cast %42 : vector<8xf32> to vector<8x1xf32>
    %cst_27 = arith.constant 3.906250e-03 : f32
    %44 = vector.broadcast %cst_27 : f32 to vector<8x1xf32>
    %45 = arith.mulf %43, %44 : vector<8x1xf32>
    %cst_28 = arith.constant dense<0.000000e+00> : vector<8x1xf32>
    %46 = tpu.matmul %3, %45, %cst_28 {dimension_numbers = #tpu.dot_dimension_numbers<[1], [0], [0], [1], [0, 0, 1, 1], [], []>} : vector<8x8xf32>, vector<8x1xf32>, vector<8x1xf32> -> vector<8x1xf32>
    %47 = arith.addf %46, %4 : vector<8x1xf32>
    %48 = arith.negf %47 : vector<8x1xf32>
    %49 = math.exp %48 : vector<8x1xf32>
    %cst_29 = arith.constant 1.000000e+00 : f32
    %50 = vector.broadcast %cst_29 : f32 to vector<8x1xf32>
    %51 = arith.addf %50, %49 : vector<8x1xf32>
    %52 = arith.divf %50, %51 : vector<8x1xf32>
    %cst_30 = arith.constant 1.000000e+00 : f32
    %53 = vector.broadcast %cst_30 : f32 to vector<8x1xf32>
    %54 = arith.addf %52, %53 : vector<8x1xf32>
    %55 = vector.broadcast %54 : vector<8x1xf32> to vector<8x256xf32>
    %56 = arith.mulf %12, %55 : vector<8x256xf32>
    %57 = vector.broadcast %41 : vector<1x256xf32> to vector<8x256xf32>
    %58 = arith.addf %57, %56 : vector<8x256xf32>
    %cst_31 = arith.constant dense<0.000000e+00> : vector<16x256xf32>
    %59 = tpu.matmul %5, %58, %cst_31 {dimension_numbers = #tpu.dot_dimension_numbers<[1], [0], [0], [1], [0, 0, 1, 1], [], []>} : vector<16x8xf32>, vector<8x256xf32>, vector<16x256xf32> -> vector<16x256xf32>
    %60 = vector.broadcast %6 : vector<16x1xf32> to vector<16x256xf32>
    %61 = arith.addf %59, %60 : vector<16x256xf32>
    %cst_32 = arith.constant 0.000000e+00 : f32
    %62 = vector.broadcast %cst_32 : f32 to vector<16x256xf32>
    %63 = arith.maximumf %61, %62 : vector<16x256xf32>
    %64 = arith.mulf %63, %1 : vector<16x256xf32>
    %65 = arith.addf %64, %1 : vector<16x256xf32>
    %c0_33 = arith.constant 0 : index
    %c0_34 = arith.constant 0 : index
    %c0_35 = arith.constant 0 : index
    %66 = vector.load %arg5[%c0_33, %c0_34, %c0_35] : memref<1x16x256xf32, #tpu.memory_space<vmem>>, vector<1x16x256xf32>
    %67 = vector.shape_cast %66 : vector<1x16x256xf32> to vector<16x256xf32>
    %68 = vector.shape_cast %65 : vector<16x256xf32> to vector<1x16x256xf32>
    tpu.vector_store %arg5[%c0_33, %c0_34, %c0_35], %68 {strides = array<i32>} : memref<1x16x256xf32, #tpu.memory_space<vmem>>, vector<1x16x256xf32>,
    return
  }
  func.func @transform_0(%arg0: i32) -> (i32, i32, i32) {
    %c0_i32 = arith.constant 0 : i32
    %c0_i32_0 = arith.constant 0 : i32
    %c0_i32_1 = arith.constant 0 : i32
    return %arg0, %c0_i32, %c0_i32_0 : i32, i32, i32
  }
  func.func @transform_1(%arg0: i32) -> (i32, i32) {
    %c0_i32 = arith.constant 0 : i32
    %c0_i32_0 = arith.constant 0 : i32
    %c0_i32_1 = arith.constant 0 : i32
    return %c0_i32, %c0_i32_0 : i32, i32
  }
  func.func @transform_2(%arg0: i32) -> (i32, i32) {
    %c0_i32 = arith.constant 0 : i32
    %c0_i32_0 = arith.constant 0 : i32
    %c0_i32_1 = arith.constant 0 : i32
    return %c0_i32, %c0_i32_0 : i32, i32
  }
  func.func @transform_3(%arg0: i32) -> (i32, i32) {
    %c0_i32 = arith.constant 0 : i32
    %c0_i32_0 = arith.constant 0 : i32
    %c0_i32_1 = arith.constant 0 : i32
    return %c0_i32, %c0_i32_0 : i32, i32
  }
  func.func @transform_4(%arg0: i32) -> (i32, i32, i32) {
    %c0_i32 = arith.constant 0 : i32
    %c0_i32_0 = arith.constant 0 : i32
    %c0_i32_1 = arith.constant 0 : i32
    return %arg0, %c0_i32, %c0_i32_0 : i32, i32, i32
  }
}

</mosaic_0001>

<bundles_post_ra>
// kernel: tpu_custom_call.1
= control target key start
LH: loop header
LB: loop body
LE: loop exit
PB: predicated region body
PF: predicated region fallthrough
CT: control target
= control target key end

     0   :  { %9 = vsyncpa [#allocation3], 0  ;;  %s2183_s0 = inlined_call_operand.vmem [shape: f32[2,16,256], index: 0, kind: input, shape index: {}]   ;;  %s2184_s1 = inlined_call_operand.vmem [shape: f32[64,128], index: 1, kind: input, shape index: {}]   ;;  %s2185_s2 = inlined_call_operand.vmem [shape: f32[32,256], index: 2, kind: input, shape index: {}]   ;;  %s2186_s3 = inlined_call_operand.vmem [shape: f32[512,16], index: 3, kind: input, shape index: {}]   ;;  %s2187_s4 = inlined_call_operand.hbm [shape: f32[2,16,256], index: 4, kind: output, shape index: {}]  }
   0x1   :  { %11 = vsyncpa [#allocation3 + $0x1], 0  ;;  %s1688_s15 = smov 0   ;;  %s1690_s16 = smov 0  }
   0x2   :  { %s1692_s17 = smov 0   ;;  %s1694_s18 = smov 0  }
   0x3 LB: > { %s1709_s19 = sadd.s32 4294967295, %s1655_s18   ;;  %s1254_s20 = sadd.s32 4294967294, %s1655_s18   ;;  %s1655_s18 = sphi %s1694_s18, %s2193_s18   ;;  %s1651_s17 = sphi %s1692_s17, %s2192_s17   ;;  %s1647_s16 = sphi %s1690_s16, %s2191_s16   ;;  %s1643_s15 = sphi %s1688_s15, %s2190_s15  }
   0x4   : > { %s1713_s21 = sadd.s32 1, %s1655_s18   ;;  %s113_s22 = sadd.s32 1, %s1651_s17 }
   0x5   : > { %s110_s23 = ssub.s32 %s1655_s18, %s1713_s21  ;;  %p123_p0 = scmp.ne.s32.totalorder %s1651_s17, %s1647_s16 }
   0x6   : > { %p111_p1 = scmp.eq.s32.totalorder %s110_s23, 0  ;;  %p124_p2 = scmp.eq.s32.totalorder %s1709_s19, 1 }
   0x7   : > { %p129_p3 = scmp.ne.s32.totalorder %s1647_s16, %s1643_s15  ;;  %p130_p4 = scmp.eq.s32.totalorder %s1254_s20, 1 }
   0x8   : > { %s1724_s24 = scalar_select %p111_p1, %s1651_s17, %s113_s22  }
   0x9   : > { %p1726_p5 = por %p124_p2, %p123_p0  ;;  %p1730_p6 = por %p130_p4, %p129_p3 }
   0xa   : > { %p1257_p7 = scmp.ge.s32.totalorder %s1655_s18, 1  ;;  %p165_p8 = scmp.lt.s32.totalorder %s1655_s18, 3 }
   0xc   : > { %p166_p9 = pnand %p1257_p7, %p165_p8 }
   0xd   : > { %p191_p10 = scmp.lt.s32.totalorder (!%p166_p9), %s1709_s19, 1  ;;  %v1657_v0 = vmov (!%p166_p9), 0.0   ;;  %v279_v7 = vld [vmem:[%s2184_s1] sm:$0xff] (!%p166_p9)  ;;  %vm280_vm0 = vcmask (!%p166_p9), 130048   ;;  %v232_v9 = vld [vmem:[%s2186_s3 + $0x88] sm:$0xff] (!%p166_p9)  ;;  %v233_v14 = vld [vmem:[%s2186_s3 + $0x90] sm:$0xff] (!%p166_p9) }
   0xe   : > { %169 = sbr.rel (%p166_p9) target bundleno = 2060 (0x80c), region = 36  ;;  %348 = vmatprep.mubr.f32.mxu0 (!%p166_p9), %v1657_v0  ;;  %423 = vmatprep.mubr.f32.mxu1 (!%p166_p9), %v1657_v0  ;;  %v231_v8 = vld [vmem:[%s2186_s3 + $0x80] sm:$0xff] (!%p166_p9)  ;;  %v216_v12 = vld [vmem:[%s2186_s3 + $0x8] sm:$0xff] (!%p166_p9)  ;;  %v234_v15 = vld [vmem:[%s2186_s3 + $0x98] sm:$0xff] (!%p166_p9)  ;;  %vm355_vm1 = vcmask (!%p166_p9), 64512   ;;  %vm1658_vm2 = vmmov (!%p166_p9), 0  }
   0xf   : > { %v1765_v10 = vpack.c.bf16 (!%p166_p9), %v232_v9, %v231_v8  ;;  %v215_v11 = vld [vmem:[%s2186_s3] sm:$0xff] (!%p166_p9)  ;;  %v217_v16 = vld [vmem:[%s2186_s3 + $0x10] sm:$0xff] (!%p166_p9)  ;;  %v1786_v17 = vpack.c.bf16 (!%p166_p9), %v234_v15, %v233_v14  ;;  %v218_v18 = vld [vmem:[%s2186_s3 + $0x18] sm:$0xff] (!%p166_p9)  ;;  %s188_s13 = sand.u32 (!%p166_p9), 1, %s1647_s16   ;;  %s1279_s23 = sshll.u32 (!%p166_p9), %s1709_s19, 9 }
  0x10   : > { %v1773_v13 = vpack.c.bf16 (!%p166_p9), %v216_v12, %v215_v11  ;;  %v1791_v19 = vpack.c.bf16 (!%p166_p9), %v218_v18, %v217_v16  ;;  %v235_v20 = vld [vmem:[%s2186_s3 + $0xa0] sm:$0xff] (!%p166_p9)  ;;  %v236_v21 = vld [vmem:[%s2186_s3 + $0xa8] sm:$0xff] (!%p166_p9)  ;;  %v237_v26 = vld [vmem:[%s2186_s3 + $0xb0] sm:$0xff] (!%p166_p9)  ;;  %s1258_s14 = sshll.u32 (!%p166_p9), %s188_s13, 5  ;;  %s2135_s29 = scalar_lea.hbm (!%p166_p9), %s2187_s4, %s1279_s23 }
  0x11   : > { %v219_v22 = vld [vmem:[%s2186_s3 + $0x20] sm:$0xff] (!%p166_p9)  ;;  %v1804_v23 = vpack.c.bf16 (!%p166_p9), %v236_v21, %v235_v20  ;;  %v220_v24 = vld [vmem:[%s2186_s3 + $0x28] sm:$0xff] (!%p166_p9)  ;;  %v238_v27 = vld [vmem:[%s2186_s3 + $0xb8] sm:$0xff] (!%p166_p9)  ;;  %s190_s20 = scalar_lea.vmem (!%p166_p9), [#allocation2], %s1258_s14 }
  0x12   : > { %v1809_v25 = vpack.c.bf16 (!%p166_p9), %v220_v24, %v219_v22  ;;  %v221_v28 = vld [vmem:[%s2186_s3 + $0x30] sm:$0xff] (!%p166_p9)  ;;  %v1822_v29 = vpack.c.bf16 (!%p166_p9), %v238_v27, %v237_v26  ;;  %v222_v30 = vld [vmem:[%s2186_s3 + $0x38] sm:$0xff] (!%p166_p9)  ;;  %v239_v32 = vld [vmem:[%s2186_s3 + $0xc0] sm:$0xff] (!%p166_p9)  ;;  %s1192_s22 = sshll.u32 (!%p166_p9), %s190_s20, 4  ;;  %s2137_s22 = int_to_ptr.vmem [resolvable:$true] %s1192_s22 }
  0x13   : > { %v1827_v31 = vpack.c.bf16 (!%p166_p9), %v222_v30, %v221_v28  ;;  %v240_v33 = vld [vmem:[%s2186_s3 + $0xc8] sm:$0xff] (!%p166_p9)  ;;  %v223_v34 = vld [vmem:[%s2186_s3 + $0x40] sm:$0xff] (!%p166_p9)  ;;  %v241_v38 = vld [vmem:[%s2186_s3 + $0xd0] sm:$0xff] (!%p166_p9)  ;;  %s1593_s30 = scalar_lea.vmem (!%p166_p9), %s2137_s22, 512 }
  0x14   : > { %v1840_v35 = vpack.c.bf16 (!%p166_p9), %v240_v33, %v239_v32  ;;  %v224_v36 = vld [vmem:[%s2186_s3 + $0x48] sm:$0xff] (!%p166_p9)  ;;  %v242_v39 = vld [vmem:[%s2186_s3 + $0xd8] sm:$0xff] (!%p166_p9)  ;;  %v225_v40 = vld [vmem:[%s2186_s3 + $0x50] sm:$0xff] (!%p166_p9)  ;;  %p1594_p11 = scmp.ne.s32.totalorder (!%p166_p9), %s2137_s22, %s1593_s30 }
  0x15   : > { %s192_s27 = scalar_select %p191_p10, %s1709_s19, 1  ;;  %v1845_v37 = vpack.c.bf16 %v224_v36, %v223_v34  ;;  %v1858_v41 = vpack.c.bf16 %v242_v39, %v241_v38  ;;  %v226_v42 = vld [vmem:[%s2186_s3 + $0x58] sm:$0xff]  ;;  %v243_v44 = vld [vmem:[%s2186_s3 + $0xe0] sm:$0xff]  ;;  %v244_v45 = vld [vmem:[%s2186_s3 + $0xe8] sm:$0xff] }
  0x16   : > { %v1863_v43 = vpack.c.bf16 %v226_v42, %v225_v40  ;;  %v1873_v46 = vpack.c.bf16 %v244_v45, %v243_v44  ;;  %v263_v47 = vld [vmem:[%s2186_s3 + $0x180] sm:$0xff]  ;;  %v264_v48 = vld [vmem:[%s2186_s3 + $0x188] sm:$0xff]  ;;  %v265_v51 = vld [vmem:[%s2186_s3 + $0x190] sm:$0xff]  ;;  %s2142_s19 = scalar_lea.sflag [#allocation3], %s188_s13  ;;  %p1595_p12 = pnand %p1594_p11, %p1726_p5 }
  0x17   : > { %s1278_s28 = sshll.u32 %s192_s27, 5  ;;  %v247_v49 = vld [vmem:[%s2186_s3 + $0x100] sm:$0xff]  ;;  %v248_v50 = vld [vmem:[%s2186_s3 + $0x108] sm:$0xff]  ;;  %v266_v52 = vld [vmem:[%s2186_s3 + $0x198] sm:$0xff]  ;;  %v1427_v54 = vpack.c.bf16 %v264_v48, %v263_v47 }
  0x18   : > { %s195_s5 = scalar_lea.vmem %s2183_s0, %s1278_s28  ;;  %v200_v56 = vld [vmem:[%s2184_s1 + $0x8] sm:$0xff]  ;;  %v1429_v57 = vpack.c.bf16 %v248_v50, %v247_v49  ;;  %v1431_v58 = vpack.c.bf16 %v266_v52, %v265_v51  ;;  %v249_v59 = vld [vmem:[%s2186_s3 + $0x110] sm:$0xff]  ;;  %v250_v60 = vld [vmem:[%s2186_s3 + $0x118] sm:$0xff]  ;;  %p1596_p13 = pneg %p1595_p12 }
  0x19   : > { %v1743_v1 = vld [vmem:[%s195_s5 + $0x8] sm:$0xff]  ;;  %v1745_v2 = vld [vmem:[%s195_s5 + $0x18] sm:$0xff]  ;;  %v1747_v3 = vld [vmem:[%s195_s5] sm:$0xff] }
  0x1a   : > { %v1423_v4 = vpack.c.bf16 %v1745_v2, %v1743_v1  ;;  %v1751_v5 = vld [vmem:[%s195_s5 + $0x10] sm:$0xff]  ;;  %v267_v62 = vld [vmem:[%s2186_s3 + $0x1a0] sm:$0xff]  ;;  %v268_v63 = vld [vmem:[%s2186_s3 + $0x1a8] sm:$0xff]  ;;  %s1660_s5 = smov [#allocation2]  }
  0x1b   : > { %v1425_v6 = vpack.c.bf16 %v1751_v5, %v1747_v3  ;;  %v252_v8 = vld [vmem:[%s2186_s3 + $0x128] sm:$0xff]  ;;  %v269_v9 = vld [vmem:[%s2186_s3 + $0x1b0] sm:$0xff]  ;;  %v270_v11 = vld [vmem:[%s2186_s3 + $0x1b8] sm:$0xff]  ;;  %s1597_s6 = sshll.u32 %s1660_s5, 4  ;;  %s1598_s6 = int_to_ptr.vmem [resolvable:$false] %s1597_s6 }
  0x1c   : > { %1424 = vmatprep.subr.bf16.mxu0 %v1423_v4  ;;  %v1433_v4 = vpack.c.bf16 %v250_v60, %v249_v59  ;;  %v1439_v14 = vpack.c.bf16 %v270_v11, %v269_v9  ;;  %v253_v15 = vld [vmem:[%s2186_s3 + $0x130] sm:$0xff]  ;;  %v254_v16 = vld [vmem:[%s2186_s3 + $0x138] sm:$0xff]  ;;  %v271_v18 = vld [vmem:[%s2186_s3 + $0x1c0] sm:$0xff]  ;;  %s1599_s7 = scalar_lea.vmem %s1598_s6, 1024  ;;  %p1600_p0 = scmp.lt.s32.totalorder %s2137_s22, %s1598_s6 }
  0x1d   : > { %1426 = vmatpush1.bf16.msra.mxu0 %v1425_v6  ;;  %v1435_v6 = vpack.c.bf16 %v268_v63, %v267_v62  ;;  %v272_v20 = vld [vmem:[%s2186_s3 + $0x1c8] sm:$0xff]  ;;  %v1441_v21 = vpack.c.bf16 %v254_v16, %v253_v15  ;;  %v255_v24 = vld [vmem:[%s2186_s3 + $0x140] sm:$0xff]  ;;  %v273_v27 = vld [vmem:[%s2186_s3 + $0x1d0] sm:$0xff]  ;;  %p1601_p1 = scmp.lt.s32.totalorder %s1599_s7, %s1593_s30 }
  0x1e   : > { %1460 = vmatprep.subr.bf16.mxu0 %v1765_v10  ;;  %v1443_v22 = vpack.c.bf16 %v272_v20, %v271_v18  ;;  %v256_v26 = vld [vmem:[%s2186_s3 + $0x148] sm:$0xff]  ;;  %v274_v28 = vld [vmem:[%s2186_s3 + $0x1d8] sm:$0xff]  ;;  %v257_v33 = vld [vmem:[%s2186_s3 + $0x150] sm:$0xff] }
  0x1f   : > { %v1445_v30 = vpack.c.bf16 %v256_v26, %v255_v24  ;;  %v1447_v32 = vpack.c.bf16 %v274_v28, %v273_v27  ;;  %v258_v34 = vld [vmem:[%s2186_s3 + $0x158] sm:$0xff]  ;;  %v275_v36 = vld [vmem:[%s2186_s3 + $0x1e0] sm:$0xff]  ;;  %v276_v38 = vld [vmem:[%s2186_s3 + $0x1e8] sm:$0xff]  ;;  %p1602_p2 = por %p1601_p1, %p1600_p0 }
  0x20   : > { %1261 = vmatmul.mubr.msk.f32.vlgmr.msra.gmra.mrb[0].mxu0 %vm280_vm0, %v279_v7  ;;  %v251_v7 = vld [vmem:[%s2186_s3 + $0x120] sm:$0xff]  ;;  %v1449_v39 = vpack.c.bf16 %v258_v34, %v257_v33  ;;  %v1451_v40 = vpack.c.bf16 %v276_v38, %v275_v36  ;;  %v260_v44 = vld [vmem:[%s2186_s3 + $0x168] sm:$0xff]  ;;  %v277_v50 = vld [vmem:[%s2186_s3 + $0x1f0] sm:$0xff] }
  0x21   : > { %1462 = vmatpush3.bf16.msra.mxu0 %v1773_v13  ;;  %v1437_v12 = vpack.c.bf16 %v252_v8, %v251_v7  ;;  %v259_v42 = vld [vmem:[%s2186_s3 + $0x160] sm:$0xff]  ;;  %v228_v48 = vld [vmem:[%s2186_s3 + $0x68] sm:$0xff]  ;;  %v278_v51 = vld [vmem:[%s2186_s3 + $0x1f8] sm:$0xff]  ;;  %p1603_p3 = pnand %p1602_p2, %p1596_p13 }
  0x22   : > { %1464 = vmatprep.subr.bf16.mxu0 %v1786_v17  ;;  %v1453_v45 = vpack.c.bf16 %v260_v44, %v259_v42  ;;  %v227_v47 = vld [vmem:[%s2186_s3 + $0x60] sm:$0xff]  ;;  %v1455_v52 = vpack.c.bf16 %v278_v51, %v277_v50  ;;  %v246_v59 = vld [vmem:[%s2186_s3 + $0xf8] sm:$0xff]  ;;  %v229_v60 = vld [vmem:[%s2186_s3 + $0x70] sm:$0xff] }
  0x23   : > { %v1980_v49 = vpack.c.bf16 %v228_v48, %v227_v47  ;;  %v230_v62 = vld [vmem:[%s2186_s3 + $0x78] sm:$0xff]  ;;  %v2011_v16 = vld [vmem:[%s2185_s2 + $0x8] sm:$0xff]  ;;  %v2026_v20 = vld [vmem:[%s2185_s2 + $0x20] sm:$0xff] }
  0x24   : > { %v2016_v18 = vld [vmem:[%s2185_s2 + $0x28] sm:$0xff]  ;;  %v2031_v26 = vld [vmem:[%s2185_s2 + $0x18] sm:$0xff]  ;;  %v2046_v38 = vld [vmem:[%s2185_s2 + $0x10] sm:$0xff] }
  0x25   : > { %1466 = vmatpush3.bf16.msra.mxu0 %v1791_v19 }
  0x26   : > { %1468 = vmatprep.subr.bf16.mxu0 %v1804_v23 }
  0x29   : > { %1470 = vmatpush3.bf16.msra.mxu0 %v1809_v25 }
  0x2a   : > { %1472 = vmatprep.subr.bf16.mxu0 %v1822_v29 }
  0x2d   : > { %1474 = vmatpush3.bf16.msra.mxu0 %v1827_v31 }
  0x2e   : > { %1476 = vmatprep.subr.bf16.mxu0 %v1840_v35 }
  0x31   : > { %1478 = vmatpush3.bf16.msra.mxu0 %v1845_v37 }
  0x32   : > { %1480 = vmatprep.subr.bf16.mxu0 %v1858_v41 }
  0x35   : > { %1482 = vmatpush3.bf16.msra.mxu0 %v1863_v43 }
  0x36   : > { %1484 = vmatprep.subr.bf16.mxu0 %v1873_v46 }
  0x39   : > { %1486 = vmatpush3.bf16.msra.mxu0 %v1980_v49 }
  0xf3   : > { %v1894_v53 = vpop.f32.mrb[0].mxu0 }
  0xf4   : > { %v1896_v55 = vpop.f32.mrb[1].mxu0 }
  0xf5   : > { %359 = vmatprep.subr.mxu1 %v1896_v55  ;;  %v1910_v61 = vadd.f32 %v1896_v55, %v1894_v53 }
  0xf6   : > { %360 = vmatpush1.msra.mxu1 %v1894_v53 }
  0xf7   : > { %1262 = vmatmul.mubr.msk.f32.vlgmr.msra.gmra.mrb[0].mxu1 %vm355_vm1, %v200_v56  ;;  %1428 = vmatprep.subr.bf16.mxu1 %v1427_v54  ;;  %v261_v54 = vld [vmem:[%s2186_s3 + $0x170] sm:$0xff]  ;;  %v262_v56 = vld [vmem:[%s2186_s3 + $0x178] sm:$0xff] }
  0xf8   : > { %1430 = vmatpush3.bf16.msra.mxu1 %v1429_v57  ;;  %v245_v57 = vld [vmem:[%s2186_s3 + $0xf0] sm:$0xff] }
  0xf9   : > { %1432 = vmatprep.subr.bf16.mxu1 %v1431_v58  ;;  %v1457_v58 = vpack.c.bf16 %v262_v56, %v261_v54  ;;  %v1487_v63 = vpack.c.bf16 %v246_v59, %v245_v57 }
  0xfb   : > { %1488 = vmatprep.subr.bf16.mxu0 %v1487_v63 }
  0xfc   : > { %1434 = vmatpush3.bf16.msra.mxu1 %v1433_v4  ;;  %v1489_v4 = vpack.c.bf16 %v230_v62, %v229_v60 }
  0xfd   : > { %1436 = vmatprep.subr.bf16.mxu1 %v1435_v6  ;;  %v430_v6 = vlaneseq }
  0xfe   : > { %1490 = vmatpush3.bf16.msra.mxu0 %v1489_v4 }
  0xff   : > { %v431_v7 = vshrl.u32 %v430_v6, 7 }
 0x100   : > { %1438 = vmatpush3.bf16.msra.mxu1 %v1437_v12 }
 0x101   : > { %1440 = vmatprep.subr.bf16.mxu1 %v1439_v14  ;;  %v432_v8 = vsub.s32 1, %v431_v7  ;;  %v519_v9 = vsub.s32 0, %v431_v7 }
 0x104   : > { %1442 = vmatpush3.bf16.msra.mxu1 %v1441_v21  ;;  %v606_v21 = vsub.s32 2, %v431_v7 }
 0x105   : > { %1444 = vmatprep.subr.bf16.mxu1 %v1443_v22 }
 0x108   : > { %1446 = vmatpush3.bf16.msra.mxu1 %v1445_v30  ;;  %v2038_v30 = vld [vmem:[%s2185_s2 + $0x38] sm:$0xff] }
 0x109   : > { %1448 = vmatprep.subr.bf16.mxu1 %v1447_v32 }
 0x10c   : > { %1450 = vmatpush3.bf16.msra.mxu1 %v1449_v39  ;;  %v2051_v39 = vld [vmem:[%s2185_s2 + $0x30] sm:$0xff] }
 0x10d   : > { %1452 = vmatprep.subr.bf16.mxu1 %v1451_v40 }
 0x110   : > { %1454 = vmatpush3.bf16.msra.mxu1 %v1453_v45 }
 0x111   : > { %1456 = vmatprep.subr.bf16.mxu1 %v1455_v52 }
 0x114   : > { %1458 = vmatpush3.bf16.msra.mxu1 %v1457_v58 }
 0x115   : > { %1492 = vmatprep.subr.bf16.mxu1 %v1765_v10  ;;  %v2021_v10 = vld [vmem:[%s2185_s2] sm:$0xff] }
 0x1ca   : > { %v425_v11 = vpop.f32.mrb[0].mxu1 }
 0x1cb   : > { %v433_v12 = vrot.slane %v425_v11, %v432_v8  ;;  %v520_v14 = vrot.slane %v425_v11, %v519_v9  ;;  %v427_v15 = vpop.f32.mrb[1].mxu1 }
 0x1cc   : > { %v437_v22 = vrot.slane %v427_v15, %v432_v8  ;;  %v524_v24 = vrot.slane %v427_v15, %v519_v9  ;;  %v611_v34 = vrot.slane %v427_v15, %v606_v21 }
 0x1cd   : > { %v438_v32 = vmul.f32 %v433_v12, %v2021_v10  ;;  %v525_v33 = vmul.f32 %v520_v14, %v2026_v20  ;;  %v440_v42 = vmul.f32 %v433_v12, %v2046_v38  ;;  %v527_v44 = vmul.f32 %v520_v14, %v2051_v39 }
 0x1ce   : > { %v439_v27 = vmul.f32 %v437_v22, %v2011_v16  ;;  %v526_v28 = vmul.f32 %v524_v24, %v2016_v18  ;;  %v441_v36 = vmul.f32 %v437_v22, %v2031_v26  ;;  %v528_v40 = vmul.f32 %v524_v24, %v2038_v30 }
 0x1cf   : > { %v613_v45 = vmul.f32 %v611_v34, %v2016_v18 }
 0x1d0   : > { %506 = vmatprep.mubr.f32.mxu1 %v439_v27  ;;  %593 = vmatprep.mubr.f32.mxu0 %v526_v28  ;;  %v1531_v27 = vpack.c.bf16 %v2038_v30, %v2016_v18 }
 0x1d1   : > { %507 = vmatmul.mubr.f32.vlgmr.msra.gmra.mrb[2].mxu1 %v438_v32  ;;  %594 = vmatmul.mubr.f32.vlgmr.msra.gmra.mrb[2].mxu0 %v525_v33 }
 0x1d2   : > { %1494 = vmatpush3.bf16.msra.mxu1 %v1773_v13  ;;  %511 = vmatprep.mubr.f32.mxu1 %v441_v36  ;;  %v607_v13 = vrot.slane %v425_v11, %v606_v21 }
 0x1d3   : > { %598 = vmatprep.mubr.f32.mxu0 %v528_v40  ;;  %1496 = vmatprep.subr.bf16.mxu1 %v1786_v17  ;;  %v1533_v40 = vpack.c.bf16 %v2051_v39, %v2026_v20 }
 0x1d4   : > { %v612_v17 = vmul.f32 %v607_v13, %v2026_v20  ;;  %v201_v20 = vld [vmem:[%s2184_s1 + $0x10] sm:$0xff] }
 0x1d5   : > { %512 = vmatmul.mubr.f32.gmra.mrb[4].mxu1 %v440_v42  ;;  %599 = vmatmul.mubr.f32.gmra.mrb[4].mxu0 %v527_v44 }
 0x1d6   : > { %1498 = vmatpush3.bf16.msra.mxu1 %v1791_v19  ;;  %680 = vmatprep.mubr.f32.mxu1 %v613_v45  ;;  %v615_v19 = vmul.f32 %v611_v34, %v2038_v30 }
 0x1d7   : > { %1500 = vmatprep.subr.bf16.mxu1 %v1804_v23  ;;  %v614_v23 = vmul.f32 %v607_v13, %v2051_v39  ;;  %v1659_v39 = vmov 0  }
 0x1d8   : > { %1579 = vset.pattern.permute.xlu1 %v1659_v39  ;;  %1580 = vset.pattern.permute.xlu0 %v1659_v39 }
 0x1da   : > { %1502 = vmatpush3.bf16.msra.mxu1 %v1809_v25 }
 0x1db   : > { %1504 = vmatprep.subr.bf16.mxu1 %v1822_v29 }
 0x1de   : > { %1506 = vmatpush3.bf16.msra.mxu1 %v1827_v31 }
 0x1df   : > { %1508 = vmatprep.subr.bf16.mxu1 %v1840_v35 }
 0x1e2   : > { %1510 = vmatpush3.bf16.msra.mxu1 %v1845_v37 }
 0x1e3   : > { %1512 = vmatprep.subr.bf16.mxu1 %v1858_v41 }
 0x1e6   : > { %1514 = vmatpush3.bf16.msra.mxu1 %v1863_v43 }
 0x1e7   : > { %1516 = vmatprep.subr.bf16.mxu1 %v1873_v46 }
 0x1ea   : > { %1518 = vmatpush3.bf16.msra.mxu1 %v1980_v49 }
 0x1eb   : > { %1520 = vmatprep.subr.bf16.mxu1 %v1487_v63 }
 0x1ee   : > { %1522 = vmatpush3.bf16.msra.mxu1 %v1489_v4 }
 0x1f1   : > { %681 = vmatmul.mubr.f32.vlgmr.msra.gmra.mrb[6].mxu1 %v612_v17 }
 0x1f2   : > { %685 = vmatprep.mubr.f32.mxu1 %v615_v19 }
 0x1f5   : > { %686 = vmatmul.mubr.f32.gmra.mrb[8].mxu1 %v614_v23 }
 0x2a4   : > { %v1312_v25 = vpop.f32.mrb[2].mxu1  ;;  %v1350_v29 = vpop.f32.mrb[2].mxu0 }
 0x2a5   : > { %v1313_v31 = vpop.f32.mrb[3].mxu1  ;;  %v1351_v35 = vpop.f32.mrb[3].mxu0 }
 0x2a6   : > { %v1314_v37 = vadd.f32 %v1313_v31, %v1312_v25  ;;  %v1352_v41 = vadd.f32 %v1351_v35, %v1350_v29 }
 0x2a8   : > { %v1315_v43 = vpop.f32.mrb[4].mxu1  ;;  %v1353_v46 = vpop.f32.mrb[4].mxu0  ;;  %1408 = vmatprep.mubr.msk.f32.mxu0 %vm280_vm0, %v1352_v41  ;;  %v202_v41 = vld [vmem:[%s2184_s1 + $0x18] sm:$0xff] }
 0x2a9   : > { %v1316_v47 = vpop.f32.mrb[5].mxu1  ;;  %v1354_v48 = vpop.f32.mrb[5].mxu0 }
 0x2aa   : > { %v1317_v49 = vadd.f32 %v1316_v47, %v1315_v43  ;;  %v1355_v50 = vadd.f32 %v1354_v48, %v1353_v46 }
 0x2ac   : > { %v1523_v51 = vpack.c.bf16 %v1317_v49, %v1314_v37 }
 0x2ae   : > { %1524 = vmatprep.subr.bf16.mxu0 %v1523_v51 }
 0x2af   : > { %1526 = vmatpush3.bf16.msra.mxu0 %v1523_v51 }
 0x2b2   : > { %1409 = vmatmul.mubr.msk.f32.vlgmr.msra.gmra.mrb[6].mxu0 %vm280_vm0, %v1355_v50 }
 0x2c4   : > { %v1388_v52 = vpop.f32.mrb[6].mxu1 }
 0x2c5   : > { %v1389_v54 = vpop.f32.mrb[7].mxu1 }
 0x2c6   : > { %v1390_v56 = vadd.f32 %v1389_v54, %v1388_v52 }
 0x2c8   : > { %v1391_v57 = vpop.f32.mrb[8].mxu1 }
 0x2c9   : > { %v1392_v58 = vpop.f32.mrb[9].mxu1 }
 0x2ca   : > { %v1393_v59 = vadd.f32 %v1392_v58, %v1391_v57 }
 0x2cc   : > { %v1527_v60 = vpack.c.bf16 %v1393_v59, %v1390_v56 }
 0x2ce   : > { %1528 = vmatprep.subr.bf16.mxu0 %v1527_v60 }
 0x2cf   : > { %1530 = vmatpush3.bf16.msra.mxu0 %v1527_v60 }
 0x2d0   : > { %1532 = vmatprep.subr.bf16.mxu0 %v1531_v27 }
 0x385   : > { %v1410_v62 = vpop.f32.mrb[6].mxu0 }
 0x386   : > { %v763_v63 = vpop.f32.mrb[7].mxu0  ;;  %v775_v6 = vsel %vm280_vm0, %v1410_v62, -inf }
 0x387   : > { %v772_v4 = vsel %vm280_vm0, %v763_v63, -inf }
 0x388   : > { %773 = vmax.xlane.f32.xlu0 %v772_v4 }
 0x38c   : > { %776 = vmax.xlane.f32.xlu0 %v775_v6 }
 0x390   : > { %977 = vadd.xlane.f32.xlu0 %v1910_v61 }
 0x415   : > { %v774_v7 = vpop.xlane.xlu0 %773 }
 0x416   : > { %v778_v8 = vsub.f32 %v763_v63, %v774_v7 }
 0x418   : > { %v780_v9 = vmul.f32 1.442695, %v778_v8 }
 0x419   : > { %v777_v11 = vpop.xlane.xlu0 %776 }
 0x41a   : > { %1581 = vpow2.f32 %v780_v9  ;;  %v779_v12 = vsub.f32 %v1410_v62, %v777_v11 }
 0x41c   : > { %v782_v14 = vmul.f32 1.442695, %v779_v12 }
 0x41d   : > { %v978_v18 = vpop.xlane.xlu0 %977 }
 0x41e   : > { %1583 = vpow2.f32 %v782_v14  ;;  %v979_v45 = vmul.f32 0.00390625, %v978_v18 }
 0x424   : > { %v1582_v15 = vpop.eup %1581 }
 0x425   : > { %v784_v21 = vsel %vm280_vm0, %v1582_v15, 0.0 }
 0x426   : > { %785 = vadd.xlane.f32.xlu1 %v784_v21  ;;  %v203_v21 = vld [vmem:[%s2184_s1 + $0x20] sm:$0xff] }
 0x428   : > { %v1584_v22 = vpop.eup %1583 }
 0x429   : > { %v787_v24 = vsel %vm280_vm0, %v1584_v22, 0.0 }
 0x42a   : > { %788 = vadd.xlane.f32.xlu1 %v787_v24 }
 0x4b3   : > { %v786_v61 = vpop.xlane.xlu1 %785 }
 0x4b4   : > { %1585 = vrcp.f32 %v786_v61 }
 0x4b7   : > { %v789_v28 = vpop.xlane.xlu1 %788 }
 0x4b8   : > { %1587 = vrcp.f32 %v789_v28 }
 0x4be   : > { %v1586_v32 = vpop.eup %1585 }
 0x4bf   : > { %v791_v33 = vmul.f32 %v1586_v32, %v1582_v15 }
 0x4c1   : > { %1415 = vmatprep.mubr.msk.f32.mxu0 %vm280_vm0, %v791_v33 }
 0x4c2   : > { %v1588_v34 = vpop.eup %1587 }
 0x4c3   : > { %v793_v36 = vmul.f32 %v1588_v34, %v1584_v22  ;;  %v204_v22 = vld [vmem:[%s2184_s1 + $0x28] sm:$0xff] }
 0x4c5   : > { %1416 = vmatmul.mubr.msk.f32.vlgmr.msra.gmra.mrb[8].mxu0 %vm280_vm0, %v793_v36 }
 0x4c6   : > { %945 = vmatprep.mubr.f32.mxu0 %v1657_v0  ;;  %1534 = vmatpush1.bf16.msra.mxu0 %v1533_v40 }
 0x4c7   : > { %1418 = vmatprep.subr.mxu0 %v1657_v0 }
 0x598   : > { %v1417_v30 = vpop.f32.mrb[8].mxu0 }
 0x599   : > { %v866_v42 = vpop.f32.mrb[9].mxu0  ;;  %v872_v13 = vadd.f32 %v1417_v30, %v1393_v59 }
 0x59a   : > { %v867_v44 = vadd.f32 %v1390_v56, %v866_v42 }
 0x59c   : > { %1267 = vmatmul.mubr.msk.f32.vlgmr.msra.gmra.mrb[10].mxu0 %vm280_vm0, %v867_v44 }
 0x59d   : > { %1419 = vmatpush3.msra.mxu0 %v979_v45  ;;  %951 = vmatprep.mubr.f32.mxu0 %v1657_v0 }
 0x5a0   : > { %1268 = vmatmul.mubr.msk.f32.gmra.mrb[12].mxu0 %vm280_vm0, %v872_v13 }
 0x5a1   : > { %1420 = vmatprep.mubr.msk.f32.mxu0 %vm1658_vm2, %v1657_v0 }
 0x5a4   : > { %1421 = vmatmul.mubr.msk.f32.vlgmr.msra.gmra.mrb[14].mxu0 %vm355_vm1, %v201_v20 }
 0x5a5   : > { %1149 = vmatprep.mubr.f32.mxu0 %v1657_v0 }
 0x66f   : > { %v947_v17 = vpop.f32.mrb[10].mxu0 }
 0x670   : > { %v949_v19 = vpop.f32.mrb[11].mxu0  ;;  %v958_v25 = vmul.f32 %v947_v17, %v2021_v10 }
 0x671   : > { %v959_v35 = vmul.f32 %v949_v19, %v2011_v16  ;;  %v206_v16 = vld [vmem:[%s2184_s1 + $0x38] sm:$0xff] }
 0x673   : > { %v953_v23 = vpop.f32.mrb[12].mxu0 }
 0x674   : > { %v960_v29 = vmul.f32 %v953_v23, %v2046_v38  ;;  %v955_v31 = vpop.f32.mrb[13].mxu0 }
 0x675   : > { %v961_v37 = vmul.f32 %v955_v31, %v2031_v26  ;;  %v205_v26 = vld [vmem:[%s2184_s1 + $0x30] sm:$0xff] }
 0x676   : > { %v962_v43 = vadd.f32 %v960_v29, %v958_v25  ;;  %1071 = vperm.xlu0 %1580, %v205_v26  }
 0x677   : > { %v969_v46 = vadd.f32 %v961_v37, %v959_v35  ;;  %v1049_v47 = vpop.f32.mrb[14].mxu0 }
 0x678   : > { %v1050_v48 = vadd.f32 %v1049_v47, %v202_v41  ;;  %v1422_v49 = vpop.f32.mrb[15].mxu0  ;;  %v963_v54 = vrot.slane %v962_v43, 4 }
 0x679   : > { %v970_v56 = vrot.slane %v969_v46, 4 }
 0x67a   : > { %v1270_v50 = vmul.f32 -1.442695, %v1050_v48  ;;  %v964_v57 = vadd.f32 %v963_v54, %v962_v43 }
 0x67b   : > { %v971_v58 = vadd.f32 %v970_v56, %v969_v46 }
 0x67c   : > { %1589 = vpow2.f32 %v1270_v50  ;;  %v965_v59 = vrot.slane %v964_v57, 2 }
 0x67d   : > { %v972_v60 = vrot.slane %v971_v58, 2 }
 0x67e   : > { %v966_v62 = vadd.f32 %v965_v59, %v964_v57 }
 0x67f   : > { %v973_v63 = vadd.f32 %v972_v60, %v971_v58 }
 0x680   : > { %v967_v4 = vrot.slane %v966_v62, 1 }
 0x681   : > { %v974_v6 = vrot.slane %v973_v63, 1 }
 0x682   : > { %v968_v8 = vadd.f32 %v967_v4, %v966_v62 }
 0x683   : > { %v975_v9 = vadd.f32 %v974_v6, %v973_v63 }
 0x686   : > { %v1590_v51 = vpop.eup %1589 }
 0x687   : > { %v1056_v10 = vadd.f32 1.0, %v1590_v51 }
 0x689   : > { %1591 = vrcp.f32 %v1056_v10 }
 0x693   : > { %v1592_v38 = vpop.eup %1591 }
 0x694   : > { %v1059_v52 = vadd.f32 1.0, %v1592_v38 }
 0x696   : > { %1062 = vperm.xlu1 %1579, %v1059_v52  }
 0x69a   : > { %1076 = vperm.xlu1 %1579, %v206_v16  }
 0x715   : > { %v1063_v7 = vpop.permute.xlu1 %1062 }
 0x716   : > { %v1065_v11 = vmul.f32 %v1063_v7, %v1894_v53  ;;  %v1066_v12 = vmul.f32 %v1063_v7, %v1896_v55  ;;  %v1072_v53 = vpop.permute.xlu0 %1071 }
 0x718   : > { %v1067_v14 = vadd.f32 %v1065_v11, %v968_v8  ;;  %v1068_v15 = vadd.f32 %v1066_v12, %v975_v9 }
 0x719   : > { %v1077_v32 = vpop.permute.xlu1 %1076 }
 0x71a   : > { %1085 = vmatprep.subr.mxu0 %v1068_v15 }
 0x71b   : > { %1086 = vmatpush1.msra.mxu0 %v1067_v14 }
 0x71c   : > { %1271 = vmatmul.mubr.msk.f32.vlgmr.msra.gmra.mrb[16].mxu0 %vm355_vm1, %v203_v21 }
 0x71d   : > { %1155 = vmatprep.mubr.f32.mxu0 %v1657_v0 }
 0x720   : > { %1272 = vmatmul.mubr.msk.f32.gmra.mrb[18].mxu0 %vm355_vm1, %v204_v22 }
 0x7ef   : > { %v1151_v55 = vpop.f32.mrb[16].mxu0 }
 0x7f0   : > { %v1153_v24 = vpop.f32.mrb[17].mxu0  ;;  %v1152_v27 = vadd.f32 %v1151_v55, %v1072_v53 }
 0x7f1   : > { %v1154_v61 = vadd.f32 %v1153_v24, %v1072_v53 }
 0x7f2   : > { %v1162_v28 = vmax.f32 %v1152_v27, 0.0 }
 0x7f3   : > { %v1157_v33 = vpop.f32.mrb[18].mxu0  ;;  %v1163_v34 = vmax.f32 %v1154_v61, 0.0 }
 0x7f4   : > { %v1158_v0 = vadd.f32 %v1157_v33, %v1077_v32  ;;  %v1159_v36 = vpop.f32.mrb[19].mxu0  ;;  %v1166_v40 = vmul.f32 %v1162_v28, %v1747_v3 }
 0x7f5   : > { %v1160_v18 = vadd.f32 %v1159_v36, %v1077_v32  ;;  %v1167_v30 = vmul.f32 %v1163_v34, %v1743_v1 }
 0x7f6   : > { %v1164_v42 = vmax.f32 %v1158_v0, 0.0  ;;  %v1170_v44 = vadd.f32 %v1166_v40, %v1747_v3 }
 0x7f7   : > { %v1165_v45 = vmax.f32 %v1160_v18, 0.0  ;;  %v1171_v13 = vadd.f32 %v1167_v30, %v1743_v1 }
 0x7f8   : > { %v1168_v20 = vmul.f32 %v1164_v42, %v1751_v5  ;;  %1174 = vst [vmem:[%s190_s20] sm:$0xff] %v1170_v44 }
 0x7f9   : > { %v1169_v39 = vmul.f32 %v1165_v45, %v1745_v2  ;;  %1175 = vst [vmem:[%s190_s20 + $0x8] sm:$0xff] %v1171_v13 }
 0x7fa   : > { %v1172_v17 = vadd.f32 %v1168_v20, %v1751_v5 }
 0x7fb   : > { %v1173_v1 = vadd.f32 %v1169_v39, %v1745_v2 }
 0x7fc   : > { %1176 = vst [vmem:[%s190_s20 + $0x10] sm:$0xff] %v1172_v17 }
 0x7fd   : > { %1177 = vst [vmem:[%s190_s20 + $0x18] sm:$0xff] %v1173_v1 }
 0x7fe   : > { %1606 = shalt.err (!%p1603_p3)
}
 0x7ff   : > { %s1607_s8 = scalar_lea.hbm %s2135_s29, 512  ;;  %s1611_s11 = scalar_lea.hbm %s2187_s4, 1024 }
 0x800   : > { %p1608_p4 = scmp.ne.s32.totalorder %s2135_s29, %s1607_s8  ;;  %p1612_p9 = scmp.lt.u32.totalorder %s2135_s29, %s2187_s4 }
 0x801   : > { %p1613_p10 = scmp.lt.u32.totalorder %s1611_s11, %s1607_s8  ;;  %p1615_p12 = scmp.lt.u32.totalorder %s1607_s8, %s2135_s29 }
 0x802   : > { %p1609_p7 = pnand %p1608_p4, %p1726_p5 }
 0x803   : > { %p1614_p11 = por %p1613_p10, %p1612_p9 }
 0x804   : > { %p1610_p8 = pneg %p1609_p7 }
 0x805   : > { %p1616_p13 = por %p1615_p12, %p1614_p11 }
 0x807   : > { %p1617_p0 = pnand %p1616_p13, %p1610_p8 }
 0x809   : > { %1620 = shalt.err (!%p1617_p0)
}
 0x80a   : > { %s1661_s14 = smov 256   ;;  %s1662_s20 = smov 16  }
 0x80b   : > { %1535 = dma.vmem_to_hbm [thread:$0]  (%p1726_p5), %s2137_s22, 512, %s2135_s29, %s2142_s19, %s1661_s14, %s1661_s14, %s1662_s20  }
 0x80c PF: > { %p1541_p1 = scmp.ge.s32.totalorder %s1655_s18, 2  ;;  %s1207_s23 = sand.u32 1, %s1643_s15  }
 0x80d   : > { %s1208_s27 = scalar_lea.sflag [#allocation3], %s1207_s23 }
 0x80e   : > { %p1538_p2 = pnand %p1541_p1, %p1730_p6 }
 0x810   : > { %1638 = dma.done.wait (!%p1538_p2), %s1208_s27, 512  }
 0x811   : > { %1640 = vsyncadd (!%p1538_p2), %s1208_s27, 4294966784  ;;  %p14_p3 = scmp.ge.s32.totalorder %s1713_s21, 4   ;;  %s2190_s15 = smov %s1647_s16 }
 0x812   : > { %s2191_s16 = smov %s1651_s17  ;;  %s2192_s17 = smov %s1724_s24 }
 0x813   : > { %s2193_s18 = smov %s1713_s21  ;;  %16 = sbr.rel (!%p14_p3) target bundleno = 3 (0x3), region = 71 }
 0x81a   :  { %1213 = vsyncpa [#allocation3], 1 }
 0x81b   :  { %1215 = vsyncpa [#allocation3 + $0x1], 1 }

</bundles_post_ra>
